<compile_context>
chip_gen: v6e
topology: v6e:2x2x1
jax: 0.10.0
libtpu: 0.0.40
codegen_flags: <defaults>
</compile_context>

<pallas_src>
import jax
import jax.numpy as jnp
from jax import lax
from jax.experimental import pallas as pl
from jax.experimental.pallas import tpu as pltpu


def _round_up(a, b):
    return ((a + b - 1) // b) * b


# ----------------------------------------------------------------------------
# Phase 1: x_spec = evecs^T @ x, accumulated over N tiles.
# Output block index is constant across the grid -> accumulator stays resident
# in VMEM; only written back to HBM once at the end.
# ----------------------------------------------------------------------------
def _project_kernel(evecs_ref, x_ref, xspec_ref):
    @pl.when(pl.program_id(0) == 0)
    def _init():
        xspec_ref[...] = jnp.zeros_like(xspec_ref)

    # Contract over the node axis: (tn, K) x (tn, Cp) -> (K, Cp)
    xspec_ref[...] += lax.dot_general(
        evecs_ref[...], x_ref[...],
        dimension_numbers=(((0,), (0,)), ((), ())),
        preferred_element_type=jnp.float32)


# ----------------------------------------------------------------------------
# Phase 2: out_tile = evecs_tile @ x_diffuse_spec + betta * x_tile
# betta arrives via scalar prefetch (SMEM); x_diffuse_spec is a small [K, Cp]
# block whose index never changes, so it is fetched into VMEM once.
# ----------------------------------------------------------------------------
def _reconstruct_kernel(betta_ref, evecs_ref, x_ref, xds_ref, out_ref):
    out_ref[...] = (
        jnp.dot(evecs_ref[...], xds_ref[...],
                preferred_element_type=jnp.float32)
        + betta_ref[0] * x_ref[...])


def time_derivative_diffusion_cgnn(x, evecs, evals, diffusion_time, alpha,
                                   betta, *, single_t=False, tile_n=512):
    """Spectral diffusion forward.  x: [N, C], evecs: [N, K], evals: [K]."""
    x = jnp.asarray(x, jnp.float32)
    evecs = jnp.asarray(evecs, jnp.float32)
    evals = jnp.asarray(evals, jnp.float32)

    N, C = x.shape
    K = evals.shape[0]

    if single_t:
        # time = diffusion_time.repeat(C)
        time = jnp.broadcast_to(
            jnp.reshape(jnp.asarray(diffusion_time, jnp.float32), (1,)), (C,))
    else:
        time = jnp.asarray(diffusion_time, jnp.float32)

    # --- layout / tiling --------------------------------------------------
    Cp = _round_up(C, 128)                 # lane-dense channel dim
    tn = min(tile_n, _round_up(N, 8))      # node tile (multiple of 8 sublanes)
    Np = _round_up(N, tn)
    n_tiles = Np // tn

    x_p = jnp.zeros((Np, Cp), jnp.float32).at[:N, :C].set(x)
    evecs_p = jnp.zeros((Np, K), jnp.float32).at[:N, :].set(evecs)
    time_p = jnp.zeros((Cp,), jnp.float32).at[:C].set(time)

    # Data-independent coefficients, alpha folded in (tiny [K, Cp]).
    coefs_minus_alpha = (jnp.exp(-evals[:, None] * time_p[None, :])
                         - jnp.asarray(alpha, jnp.float32))

    # --- phase 1: project into spectral space ------------------------------
    x_spec = pl.pallas_call(
        _project_kernel,
        out_shape=jax.ShapeDtypeStruct((K, Cp), jnp.float32),
        grid_spec=pltpu.PrefetchScalarGridSpec(
            num_scalar_prefetch=0,
            grid=(n_tiles,),
            in_specs=[
                pl.BlockSpec((tn, K), lambda i: (i, 0)),    # evecs tile
                pl.BlockSpec((tn, Cp), lambda i: (i, 0)),   # x tile
            ],
            out_specs=pl.BlockSpec((K, Cp), lambda i: (0, 0)),
        ),
        compiler_params=pltpu.CompilerParams(
            dimension_semantics=("arbitrary",)),
    )(evecs_p, x_p)

    # Spectral-space elementwise step (tiny, K x Cp): coefs*x_spec - alpha*x_spec
    x_diffuse_spec = coefs_minus_alpha * x_spec

    betta_arr = jnp.reshape(jnp.asarray(betta, jnp.float32), (1,))

    # --- phase 2: reconstruct in node space --------------------------------
    out_p = pl.pallas_call(
        _reconstruct_kernel,
        out_shape=jax.ShapeDtypeStruct((Np, Cp), jnp.float32),
        grid_spec=pltpu.PrefetchScalarGridSpec(
            num_scalar_prefetch=1,                           # betta -> SMEM
            grid=(n_tiles,),
            in_specs=[
                pl.BlockSpec((tn, K), lambda i, b: (i, 0)),   # evecs tile
                pl.BlockSpec((tn, Cp), lambda i, b: (i, 0)),  # x tile
                pl.BlockSpec((K, Cp), lambda i, b: (0, 0)),   # x_diffuse_spec
            ],
            out_specs=pl.BlockSpec((tn, Cp), lambda i, b: (i, 0)),
        ),
        compiler_params=pltpu.CompilerParams(
            dimension_semantics=("parallel",)),
    )(betta_arr, evecs_p, x_p, x_diffuse_spec)

    return out_p[:N, :C]


def _reference(x, evecs, evals, time, alpha, betta):
    x_spec = evecs.T @ x
    coefs = jnp.exp(-evals[:, None] * time[None, :])
    x_diffuse_spec = coefs * x_spec - alpha * x_spec
    return evecs @ x_diffuse_spec + betta * x


if __name__ == "__main__":
    # Small, module-consistent shapes; N chosen so the kernel exercises
    # multi-tile accumulation and N / C padding (tile_n=256 -> 4 node tiles).
    N = 1000         # num_nodes
    K = 64           # number of eigenvectors / eigenvalues
    C = 16           # C_inout (channels)
    single_t = False

    key = jax.random.PRNGKey(0)
    kx, kvec, keval = jax.random.split(key, 3)

    x = jax.random.normal(kx, (N, C), dtype=jnp.float32)
    evecs = jax.random.normal(kvec, (N, K), dtype=jnp.float32) / jnp.sqrt(N)
    evals = jnp.abs(jax.random.normal(keval, (K,), dtype=jnp.float32))

    # Non-trivial parameters so every term of the forward is exercised.
    diffusion_time = 0.05 * jnp.arange(1, C + 1, dtype=jnp.float32)
    alpha = jnp.float32(0.25)
    betta = jnp.float32(0.5)

    out = time_derivative_diffusion_cgnn(
        x, evecs, evals, diffusion_time, alpha, betta,
        single_t=single_t, tile_n=256)
    out = jax.block_until_ready(out)

    time_ref = (jnp.broadcast_to(diffusion_time[:1], (C,))
                if single_t else diffusion_time)
    ref = _reference(x, evecs, evals, time_ref, alpha, betta)

    assert out.shape == (N, C)
    assert jnp.allclose(out, ref, atol=1e-4, rtol=1e-3), (
        float(jnp.max(jnp.abs(out - ref))))

    print("KERNEL_OK")
</pallas_src>

<mosaic_0001>
module attributes {stable_mosaic.version = 11 : i64} {
  func.func @_project_kernel(%arg0: i32, %arg1: memref<256x64xf32, #tpu.memory_space<vmem>>, %arg2: memref<256x128xf32, #tpu.memory_space<vmem>>, %arg3: memref<64x128xf32, #tpu.memory_space<vmem>>) attributes {dimension_semantics = [#tpu.dimension_semantics<arbitrary>], iteration_bounds = array<i64: 4>, scalar_prefetch = 0 : i64, scratch_operands = 0 : i64, tpu.core_type = #tpu.core_type<tc>, window_params = [{transform_indices = @transform_0, window_bounds = array<i64: 256, 64>}, {transform_indices = @transform_1, window_bounds = array<i64: 256, 128>}, {pipeline_mode = #tpu.pipeline_mode<synchronous>, transform_indices = @transform_2, window_bounds = array<i64: 64, 128>}]} {
    %c0_i32 = arith.constant 0 : i32
    %0 = arith.cmpi eq, %arg0, %c0_i32 : i32
    %1 = arith.extui %0 : i1 to i32
    %c0_i32_0 = arith.constant 0 : i32
    %2 = arith.cmpi ne, %1, %c0_i32_0 : i32
    scf.if %2 {
      %cst_8 = arith.constant 0.000000e+00 : f32
      %9 = vector.broadcast %cst_8 : f32 to vector<64x128xf32>
      %c0_9 = arith.constant 0 : index
      %c0_10 = arith.constant 0 : index
      %10 = vector.load %arg3[%c0_9, %c0_10] : memref<64x128xf32, #tpu.memory_space<vmem>>, vector<64x128xf32>
      tpu.vector_store %arg3[%c0_9, %c0_10], %9 {strides = array<i32>} : memref<64x128xf32, #tpu.memory_space<vmem>>, vector<64x128xf32>,
    } else {
    }
    %c0 = arith.constant 0 : index
    %c0_1 = arith.constant 0 : index
    %3 = vector.load %arg3[%c0, %c0_1] : memref<64x128xf32, #tpu.memory_space<vmem>>, vector<64x128xf32>
    %c0_2 = arith.constant 0 : index
    %c0_3 = arith.constant 0 : index
    %4 = vector.load %arg1[%c0_2, %c0_3] : memref<256x64xf32, #tpu.memory_space<vmem>>, vector<256x64xf32>
    %c0_4 = arith.constant 0 : index
    %c0_5 = arith.constant 0 : index
    %5 = vector.load %arg2[%c0_4, %c0_5] : memref<256x128xf32, #tpu.memory_space<vmem>>, vector<256x128xf32>
    %cst = arith.constant dense<0.000000e+00> : vector<64x128xf32>
    %6 = tpu.matmul %4, %5, %cst {dimension_numbers = #tpu.dot_dimension_numbers<[0], [0], [1], [1], [0, 1, 1, 1], [], []>} : vector<256x64xf32>, vector<256x128xf32>, vector<64x128xf32> -> vector<64x128xf32>
    %7 = arith.addf %3, %6 : vector<64x128xf32>
    %c0_6 = arith.constant 0 : index
    %c0_7 = arith.constant 0 : index
    %8 = vector.load %arg3[%c0_6, %c0_7] : memref<64x128xf32, #tpu.memory_space<vmem>>, vector<64x128xf32>
    tpu.vector_store %arg3[%c0_6, %c0_7], %7 {strides = array<i32>} : memref<64x128xf32, #tpu.memory_space<vmem>>, vector<64x128xf32>,
    return
  }
  func.func @transform_0(%arg0: i32) -> (i32, i32) {
    %c0_i32 = arith.constant 0 : i32
    %c0_i32_0 = arith.constant 0 : i32
    return %arg0, %c0_i32 : i32, i32
  }
  func.func @transform_1(%arg0: i32) -> (i32, i32) {
    %c0_i32 = arith.constant 0 : i32
    %c0_i32_0 = arith.constant 0 : i32
    return %arg0, %c0_i32 : i32, i32
  }
  func.func @transform_2(%arg0: i32) -> (i32, i32) {
    %c0_i32 = arith.constant 0 : i32
    %c0_i32_0 = arith.constant 0 : i32
    %c0_i32_1 = arith.constant 0 : i32
    return %c0_i32, %c0_i32_0 : i32, i32
  }
}

</mosaic_0001>

<bundles_post_ra>
// kernel: tpu_custom_call.1
= control target key start
LH: loop header
LB: loop body
LE: loop exit
PB: predicated region body
PF: predicated region fallthrough
CT: control target
= control target key end

     0   :  { %7 = vsyncpa [#allocation3], 0  ;;  %s729_s9 = smov 0   ;;  %s830_s0 = inlined_call_operand.vmem [shape: f32[1024,64], index: 0, kind: input, shape index: {}]   ;;  %s831_s1 = inlined_call_operand.vmem [shape: f32[1024,128], index: 1, kind: input, shape index: {}]   ;;  %s832_s2 = inlined_call_operand.hbm [shape: f32[64,128], index: 2, kind: output, shape index: {}]  }
   0x1 LB: > { %s735_s10 = sadd.s32 4294967295, %s708_s9   ;;  %p486_p0 = scmp.ge.s32.totalorder %s708_s9, 1  ;;  %s708_s9 = sphi %s729_s9, %s13_s9  }
   0x2   : > { %p120_p1 = scmp.lt.s32.totalorder %s708_s9, 5 }
   0x4   : > { %p121_p2 = pnand %p486_p0, %p120_p1 }
   0x5   : > { %s487_s11 = sshll.u32 (!%p121_p2), %s735_s10, 5  ;;  %p491_p4 = scmp.ne.s32.totalorder (!%p121_p2), %s735_s10, 0 }
   0x6   : > { %124 = sbr.rel (%p121_p2) target bundleno = 386 (0x182), region = 28  ;;  %p143_p3 = scmp.lt.s32.totalorder (!%p121_p2), %s487_s11, 127 }
   0xb   : > { %s834_s11 = smov (!%p143_p3, %s487_s11), 127  ;;  %157 = sbr.rel (%p491_p4) target bundleno = 21 (0x15), region = 32 }
   0xc   : > { %s488_s12 = sshll.u32 %s834_s11, 3 }
   0xd   : > { %s743_s15 = scalar_lea.vmem %s830_s0, %s488_s12  ;;  %s748_s18 = scalar_lea.vmem %s831_s1, %s488_s12 }
  0x10   : > { %v710_v0 = vmov 0.0  }
  0x11   : > { %158 = vst [vmem:[#allocation2] sm:$0xff] %v710_v0  ;;  %159 = vst [vmem:[#allocation2 + $0x8] sm:$0xff] %v710_v0 }
  0x12   : > { %160 = vst [vmem:[#allocation2 + $0x10] sm:$0xff] %v710_v0  ;;  %161 = vst [vmem:[#allocation2 + $0x18] sm:$0xff] %v710_v0 }
  0x13   : > { %162 = vst [vmem:[#allocation2 + $0x20] sm:$0xff] %v710_v0  ;;  %163 = vst [vmem:[#allocation2 + $0x28] sm:$0xff] %v710_v0 }
  0x14   : > { %164 = vst [vmem:[#allocation2 + $0x30] sm:$0xff] %v710_v0  ;;  %165 = vst [vmem:[#allocation2 + $0x38] sm:$0xff] %v710_v0 }
  0x15 PF: > { %v174_v1 = vld [vmem:[%s743_s15] sm:$0xff]  ;;  %v175_v3 = vld [vmem:[%s743_s15 + $0x8] sm:$0xff]  ;;  %v176_v7 = vld [vmem:[%s743_s15 + $0x10] sm:$0xff]  ;;  %s711_s19 = smov [#allocation2]   ;;  %p588_p5 = scmp.eq.s32.totalorder %s735_s10, 3 }
  0x16   : > { %v190_v2 = vld [vmem:[%s743_s15 + $0x80] sm:$0xff]  ;;  %v191_v5 = vld [vmem:[%s743_s15 + $0x88] sm:$0xff]  ;;  %v192_v8 = vld [vmem:[%s743_s15 + $0x90] sm:$0xff]  ;;  %s429_s20 = sshll.u32 %s711_s19, 4  ;;  %s430_s20 = int_to_ptr.vmem [resolvable:$true] %s429_s20 }
  0x17   : > { %v602_v4 = vpack.i.bf16 %v174_v1, %v190_v2  ;;  %v604_v6 = vpack.i.bf16 %v175_v3, %v191_v5  ;;  %v606_v9 = vpack.i.bf16 %v176_v7, %v192_v8  ;;  %v177_v10 = vld [vmem:[%s743_s15 + $0x18] sm:$0xff]  ;;  %v236_v15 = vld [vmem:[%s748_s18 + $0xf0] sm:$0xff]  ;;  %v178_v17 = vld [vmem:[%s743_s15 + $0x20] sm:$0xff]  ;;  %s674_s21 = scalar_lea.vmem %s430_s20, 1024  ;;  %p681_p9 = scmp.lt.s32.totalorder %s430_s20, %s430_s20 }
  0x18   : > { %v193_v11 = vld [vmem:[%s743_s15 + $0x98] sm:$0xff]  ;;  %v220_v16 = vld [vmem:[%s748_s18 + $0x70] sm:$0xff]  ;;  %v194_v18 = vld [vmem:[%s743_s15 + $0xa0] sm:$0xff]  ;;  %p675_p6 = scmp.ne.s32.totalorder %s430_s20, %s674_s21  ;;  %p682_p10 = scmp.lt.s32.totalorder %s674_s21, %s674_s21 }
  0x19   : > { %603 = vxpose.xlu0.b32.start [1/16] (narrow) %v602_v4, 64  ;;  %v237_v12 = vld [vmem:[%s748_s18 + $0xf8] sm:$0xff]  ;;  %v608_v13 = vpack.i.bf16 %v177_v10, %v193_v11  ;;  %v235_v19 = vld [vmem:[%s748_s18 + $0xe8] sm:$0xff]  ;;  %v234_v21 = vld [vmem:[%s748_s18 + $0xe0] sm:$0xff]  ;;  %v610_v22 = vpack.i.bf16 %v178_v17, %v194_v18 }
  0x1a   : > { %496 = vmatprep.subr.mxu0 %v237_v12  ;;  %v221_v14 = vld [vmem:[%s748_s18 + $0x78] sm:$0xff]  ;;  %552 = vmatprep.subr.mxu1 %v237_v12  ;;  %v219_v20 = vld [vmem:[%s748_s18 + $0x68] sm:$0xff]  ;;  %v218_v23 = vld [vmem:[%s748_s18 + $0x60] sm:$0xff]  ;;  %p676_p7 = pnand %p675_p6, %p588_p5  ;;  %p683_p11 = por %p682_p10, %p681_p9 }
  0x1b   : > { %497 = vmatpush3.msra.mxu0 %v221_v14  ;;  %568 = vmatpush3.msra.mxu1 %v221_v14  ;;  %v179_v24 = vld [vmem:[%s743_s15 + $0x28] sm:$0xff]  ;;  %v233_v26 = vld [vmem:[%s748_s18 + $0xd8] sm:$0xff]  ;;  %v232_v28 = vld [vmem:[%s748_s18 + $0xd0] sm:$0xff] }
  0x1c   : > { %498 = vmatprep.subr.mxu0 %v236_v15  ;;  %553 = vmatprep.subr.mxu1 %v236_v15  ;;  %v195_v25 = vld [vmem:[%s743_s15 + $0xa8] sm:$0xff]  ;;  %v217_v27 = vld [vmem:[%s748_s18 + $0x58] sm:$0xff]  ;;  %v216_v30 = vld [vmem:[%s748_s18 + $0x50] sm:$0xff]  ;;  %p677_p8 = pneg %p676_p7 }
  0x1d   : > { %605 = vxpose.xlu0.b32.cont [2/16] (narrow) %v604_v6, 64  ;;  %499 = vmatpush3.msra.mxu0 %v220_v16  ;;  %v612_v29 = vpack.i.bf16 %v179_v24, %v195_v25  ;;  %v180_v31 = vld [vmem:[%s743_s15 + $0x30] sm:$0xff]  ;;  %v231_v33 = vld [vmem:[%s748_s18 + $0xc8] sm:$0xff]  ;;  %v230_v35 = vld [vmem:[%s748_s18 + $0xc0] sm:$0xff] }
  0x1e   : > { %500 = vmatprep.subr.mxu0 %v235_v19  ;;  %569 = vmatpush3.msra.mxu1 %v220_v16  ;;  %v196_v32 = vld [vmem:[%s743_s15 + $0xb0] sm:$0xff]  ;;  %v215_v34 = vld [vmem:[%s748_s18 + $0x48] sm:$0xff]  ;;  %v214_v37 = vld [vmem:[%s748_s18 + $0x40] sm:$0xff]  ;;  %p684_p12 = pnand %p683_p11, %p677_p8 }
  0x1f   : > { %501 = vmatpush3.msra.mxu0 %v219_v20  ;;  %554 = vmatprep.subr.mxu1 %v235_v19  ;;  %v614_v36 = vpack.i.bf16 %v180_v31, %v196_v32  ;;  %v181_v38 = vld [vmem:[%s743_s15 + $0x38] sm:$0xff]  ;;  %v228_v42 = vld [vmem:[%s748_s18 + $0xb0] sm:$0xff]  ;;  %v182_v45 = vld [vmem:[%s743_s15 + $0x40] sm:$0xff] }
  0x20   : > { %502 = vmatprep.subr.mxu0 %v234_v21  ;;  %570 = vmatpush3.msra.mxu1 %v219_v20  ;;  %v197_v39 = vld [vmem:[%s743_s15 + $0xb8] sm:$0xff]  ;;  %v212_v44 = vld [vmem:[%s748_s18 + $0x30] sm:$0xff]  ;;  %v198_v46 = vld [vmem:[%s743_s15 + $0xc0] sm:$0xff] }
  0x21   : > { %607 = vxpose.xlu0.b32.cont [3/16] (narrow) %v606_v9, 64  ;;  %503 = vmatpush3.msra.mxu0 %v218_v23  ;;  %v229_v40 = vld [vmem:[%s748_s18 + $0xb8] sm:$0xff]  ;;  %v616_v43 = vpack.i.bf16 %v181_v38, %v197_v39  ;;  %v227_v47 = vld [vmem:[%s748_s18 + $0xa8] sm:$0xff]  ;;  %v226_v49 = vld [vmem:[%s748_s18 + $0xa0] sm:$0xff]  ;;  %v618_v50 = vpack.i.bf16 %v182_v45, %v198_v46 }
  0x22   : > { %504 = vmatprep.subr.mxu0 %v233_v26  ;;  %555 = vmatprep.subr.mxu1 %v234_v21  ;;  %v213_v41 = vld [vmem:[%s748_s18 + $0x38] sm:$0xff]  ;;  %v211_v48 = vld [vmem:[%s748_s18 + $0x28] sm:$0xff]  ;;  %v210_v51 = vld [vmem:[%s748_s18 + $0x20] sm:$0xff] }
  0x23   : > { %505 = vmatpush3.msra.mxu0 %v217_v27  ;;  %571 = vmatpush3.msra.mxu1 %v218_v23  ;;  %v183_v52 = vld [vmem:[%s743_s15 + $0x48] sm:$0xff]  ;;  %v225_v54 = vld [vmem:[%s748_s18 + $0x98] sm:$0xff]  ;;  %v224_v56 = vld [vmem:[%s748_s18 + $0x90] sm:$0xff] }
  0x24   : > { %506 = vmatprep.subr.mxu0 %v232_v28  ;;  %556 = vmatprep.subr.mxu1 %v233_v26  ;;  %v199_v53 = vld [vmem:[%s743_s15 + $0xc8] sm:$0xff]  ;;  %v209_v55 = vld [vmem:[%s748_s18 + $0x18] sm:$0xff]  ;;  %v208_v58 = vld [vmem:[%s748_s18 + $0x10] sm:$0xff] }
  0x25   : > { %609 = vxpose.xlu0.b32.cont [4/16] (narrow) %v608_v13, 64  ;;  %507 = vmatpush3.msra.mxu0 %v216_v30  ;;  %v620_v57 = vpack.i.bf16 %v183_v52, %v199_v53  ;;  %v184_v59 = vld [vmem:[%s743_s15 + $0x50] sm:$0xff]  ;;  %v223_v61 = vld [vmem:[%s748_s18 + $0x88] sm:$0xff]  ;;  %v222_v63 = vld [vmem:[%s748_s18 + $0x80] sm:$0xff] }
  0x26   : > { %508 = vmatprep.subr.mxu0 %v231_v33  ;;  %572 = vmatpush3.msra.mxu1 %v217_v27  ;;  %v200_v60 = vld [vmem:[%s743_s15 + $0xd0] sm:$0xff]  ;;  %v207_v62 = vld [vmem:[%s748_s18 + $0x8] sm:$0xff]  ;;  %v206_v1 = vld [vmem:[%s748_s18] sm:$0xff] }
  0x27   : > { %509 = vmatpush3.msra.mxu0 %v215_v34  ;;  %557 = vmatprep.subr.mxu1 %v232_v28  ;;  %v622_v0 = vpack.i.bf16 %v184_v59, %v200_v60  ;;  %v185_v2 = vld [vmem:[%s743_s15 + $0x58] sm:$0xff]  ;;  %v186_v5 = vld [vmem:[%s743_s15 + $0x60] sm:$0xff]  ;;  %v187_v8 = vld [vmem:[%s743_s15 + $0x68] sm:$0xff] }
  0x28   : > { %510 = vmatprep.subr.mxu0 %v230_v35  ;;  %573 = vmatpush3.msra.mxu1 %v216_v30  ;;  %v201_v3 = vld [vmem:[%s743_s15 + $0xd8] sm:$0xff]  ;;  %v202_v6 = vld [vmem:[%s743_s15 + $0xe0] sm:$0xff]  ;;  %v203_v9 = vld [vmem:[%s743_s15 + $0xe8] sm:$0xff] }
  0x29   : > { %611 = vxpose.xlu0.b32.cont [5/16] (narrow) %v610_v22, 64  ;;  %511 = vmatpush3.msra.mxu0 %v214_v37  ;;  %v624_v4 = vpack.i.bf16 %v185_v2, %v201_v3  ;;  %v626_v7 = vpack.i.bf16 %v186_v5, %v202_v6  ;;  %v628_v10 = vpack.i.bf16 %v187_v8, %v203_v9  ;;  %v188_v11 = vld [vmem:[%s743_s15 + $0x70] sm:$0xff]  ;;  %v189_v14 = vld [vmem:[%s743_s15 + $0x78] sm:$0xff]  ;;  %v171_v3 = vld [vmem:[#allocation2 + $0x28] sm:$0xff] }
  0x2a   : > { %512 = vmatprep.subr.mxu0 %v229_v40  ;;  %558 = vmatprep.subr.mxu1 %v231_v33  ;;  %v204_v12 = vld [vmem:[%s743_s15 + $0xf0] sm:$0xff]  ;;  %v205_v15 = vld [vmem:[%s743_s15 + $0xf8] sm:$0xff] }
  0x2b   : > { %513 = vmatpush3.msra.mxu0 %v213_v41  ;;  %574 = vmatpush3.msra.mxu1 %v215_v34  ;;  %v630_v13 = vpack.i.bf16 %v188_v11, %v204_v12  ;;  %v632_v16 = vpack.i.bf16 %v189_v14, %v205_v15  ;;  %v168_v52 = vld [vmem:[#allocation2 + $0x10] sm:$0xff] }
  0x2c   : > { %514 = vmatprep.subr.mxu0 %v228_v42  ;;  %559 = vmatprep.subr.mxu1 %v230_v35  ;;  %v172_v8 = vld [vmem:[#allocation2 + $0x30] sm:$0xff] }
  0x2d   : > { %613 = vxpose.xlu0.b32.cont [6/16] (narrow) %v612_v29, 64  ;;  %515 = vmatpush3.msra.mxu0 %v212_v44 }
  0x2e   : > { %516 = vmatprep.subr.mxu0 %v227_v47  ;;  %575 = vmatpush3.msra.mxu1 %v214_v37 }
  0x2f   : > { %517 = vmatpush3.msra.mxu0 %v211_v48  ;;  %560 = vmatprep.subr.mxu1 %v229_v40 }
  0x30   : > { %518 = vmatprep.subr.mxu0 %v226_v49  ;;  %576 = vmatpush3.msra.mxu1 %v213_v41 }
  0x31   : > { %615 = vxpose.xlu0.b32.cont [7/16] (narrow) %v614_v36, 64  ;;  %519 = vmatpush3.msra.mxu0 %v210_v51 }
  0x32   : > { %520 = vmatprep.subr.mxu0 %v225_v54  ;;  %561 = vmatprep.subr.mxu1 %v228_v42  ;;  %v166_v42 = vld [vmem:[#allocation2] sm:$0xff] }
  0x33   : > { %521 = vmatpush3.msra.mxu0 %v209_v55  ;;  %577 = vmatpush3.msra.mxu1 %v212_v44 }
  0x34   : > { %522 = vmatprep.subr.mxu0 %v224_v56  ;;  %562 = vmatprep.subr.mxu1 %v227_v47  ;;  %v167_v47 = vld [vmem:[#allocation2 + $0x8] sm:$0xff] }
  0x35   : > { %617 = vxpose.xlu0.b32.cont [8/16] (narrow) %v616_v43, 64  ;;  %523 = vmatpush3.msra.mxu0 %v208_v58 }
  0x36   : > { %524 = vmatprep.subr.mxu0 %v223_v61  ;;  %578 = vmatpush3.msra.mxu1 %v211_v48 }
  0x37   : > { %525 = vmatpush3.msra.mxu0 %v207_v62  ;;  %563 = vmatprep.subr.mxu1 %v226_v49 }
  0x38   : > { %526 = vmatprep.subr.mxu0 %v222_v63  ;;  %579 = vmatpush3.msra.mxu1 %v210_v51 }
  0x39   : > { %619 = vxpose.xlu0.b32.cont [9/16] (narrow) %v618_v50, 64  ;;  %527 = vmatpush3.msra.mxu0 %v206_v1 }
  0x3a   : > { %564 = vmatprep.subr.mxu1 %v225_v54 }
  0x3b   : > { %580 = vmatpush3.msra.mxu1 %v209_v55 }
  0x3c   : > { %565 = vmatprep.subr.mxu1 %v224_v56 }
  0x3d   : > { %621 = vxpose.xlu0.b32.cont [10/16] (narrow) %v620_v57, 64  ;;  %581 = vmatpush3.msra.mxu1 %v208_v58  ;;  %v169_v57 = vld [vmem:[#allocation2 + $0x18] sm:$0xff] }
  0x3e   : > { %566 = vmatprep.subr.mxu1 %v223_v61 }
  0x3f   : > { %582 = vmatpush3.msra.mxu1 %v207_v62  ;;  %v170_v62 = vld [vmem:[#allocation2 + $0x20] sm:$0xff] }
  0x40   : > { %567 = vmatprep.subr.mxu1 %v222_v63 }
  0x41   : > { %623 = vxpose.xlu0.b32.cont [11/16] (narrow) %v622_v0, 64  ;;  %583 = vmatpush3.msra.mxu1 %v206_v1 }
  0x45   : > { %625 = vxpose.xlu0.b32.cont [12/16] (narrow) %v624_v4, 64 }
  0x49   : > { %627 = vxpose.xlu0.b32.cont [13/16] (narrow) %v626_v7, 64 }
  0x4d   : > { %629 = vxpose.xlu0.b32.cont [14/16] (narrow) %v628_v10, 64 }
  0x51   : > { %631 = vxpose.xlu0.b32.cont [15/16] (narrow) %v630_v13, 64  ;;  %v173_v13 = vld [vmem:[#allocation2 + $0x38] sm:$0xff] }
  0x55   : > { %633 = vxpose.xlu0.b32.end [16/16] (narrow) %v632_v16, 64 }
  0x95   : > { %v634_v17 = vpop.trf.xlu0 }
  0x96   : > { %v635_v18 = vunpack.i.l.bf16 %v634_v17  ;;  %v638_v19 = vunpack.i.h.bf16 %v634_v17 }
  0x98   : > { %366 = vmatprep.mubr.f32.mxu0 %v635_v18 }
  0x99   : > { %v639_v20 = vpop.trf.xlu0  ;;  %367 = vmatmul.mubr.f32.vlgmr.msra.gmra.mxu0 %v638_v19 }
  0x9a   : > { %v640_v21 = vunpack.i.l.bf16 %v639_v20  ;;  %v643_v22 = vunpack.i.h.bf16 %v639_v20 }
  0x9c   : > { %371 = vmatprep.mubr.f32.mxu0 %v640_v21 }
  0x9d   : > { %v644_v23 = vpop.trf.xlu0  ;;  %372 = vmatmul.mubr.f32.gmra.mxu0 %v643_v22 }
  0x9e   : > { %v645_v24 = vunpack.i.l.bf16 %v644_v23  ;;  %v648_v25 = vunpack.i.h.bf16 %v644_v23 }
  0xa0   : > { %376 = vmatprep.mubr.f32.mxu0 %v645_v24 }
  0xa1   : > { %v649_v26 = vpop.trf.xlu0  ;;  %377 = vmatmul.mubr.f32.gmra.mxu0 %v648_v25 }
  0xa2   : > { %v650_v27 = vunpack.i.l.bf16 %v649_v26  ;;  %v653_v28 = vunpack.i.h.bf16 %v649_v26 }
  0xa4   : > { %381 = vmatprep.mubr.f32.mxu0 %v650_v27 }
  0xa5   : > { %v654_v29 = vpop.trf.xlu0  ;;  %382 = vmatmul.mubr.f32.gmra.mxu0 %v653_v28 }
  0xa6   : > { %v655_v30 = vunpack.i.l.bf16 %v654_v29  ;;  %v658_v31 = vunpack.i.h.bf16 %v654_v29 }
  0xa8   : > { %386 = vmatprep.mubr.f32.mxu1 %v655_v30 }
  0xa9   : > { %v659_v32 = vpop.trf.xlu0  ;;  %387 = vmatmul.mubr.f32.vlgmr.msra.gmra.mxu1 %v658_v31 }
  0xaa   : > { %v660_v33 = vunpack.i.l.bf16 %v659_v32  ;;  %v663_v34 = vunpack.i.h.bf16 %v659_v32 }
  0xac   : > { %391 = vmatprep.mubr.f32.mxu1 %v660_v33 }
  0xad   : > { %v664_v35 = vpop.trf.xlu0  ;;  %392 = vmatmul.mubr.f32.gmra.mxu1 %v663_v34 }
  0xae   : > { %v665_v36 = vunpack.i.l.bf16 %v664_v35  ;;  %v668_v37 = vunpack.i.h.bf16 %v664_v35 }
  0xb0   : > { %396 = vmatprep.mubr.f32.mxu1 %v665_v36 }
  0xb1   : > { %v669_v38 = vpop.trf.xlu0  ;;  %397 = vmatmul.mubr.f32.gmra.mxu1 %v668_v37 }
  0xb2   : > { %v673_v39 = vunpack.i.h.bf16 %v669_v38  ;;  %v670_v40 = vunpack.i.l.bf16 %v669_v38 }
  0xb4   : > { %401 = vmatprep.mubr.f32.mxu1 %v670_v40 }
  0xb5   : > { %402 = vmatmul.mubr.f32.gmra.mxu1 %v673_v39 }
 0x159   : > { %v528_v41 = vpop.f32.mrf.mxu0 }
 0x15b   : > { %v529_v43 = vpop.f32.mrf.mxu0 }
 0x15c   : > { %v530_v44 = vadd.f32 %v529_v43, %v528_v41 }
 0x15d   : > { %v531_v45 = vpop.f32.mrf.mxu0 }
 0x15e   : > { %v407_v46 = vadd.f32 %v530_v44, %v166_v42 }
 0x15f   : > { %v532_v48 = vpop.f32.mrf.mxu0 }
 0x160   : > { %415 = vst [vmem:[#allocation2] sm:$0xff] %v407_v46  ;;  %v533_v49 = vadd.f32 %v532_v48, %v531_v45 }
 0x161   : > { %v534_v50 = vpop.f32.mrf.mxu0 }
 0x162   : > { %v408_v51 = vadd.f32 %v533_v49, %v167_v47 }
 0x163   : > { %v535_v53 = vpop.f32.mrf.mxu0 }
 0x164   : > { %416 = vst [vmem:[#allocation2 + $0x8] sm:$0xff] %v408_v51  ;;  %v536_v54 = vadd.f32 %v535_v53, %v534_v50 }
 0x165   : > { %v537_v55 = vpop.f32.mrf.mxu0 }
 0x166   : > { %v409_v56 = vadd.f32 %v536_v54, %v168_v52 }
 0x167   : > { %v538_v58 = vpop.f32.mrf.mxu0 }
 0x168   : > { %417 = vst [vmem:[#allocation2 + $0x10] sm:$0xff] %v409_v56  ;;  %v539_v59 = vadd.f32 %v538_v58, %v537_v55 }
 0x169   : > { %v540_v60 = vpop.f32.mrf.mxu1 }
 0x16a   : > { %v410_v61 = vadd.f32 %v539_v59, %v169_v57 }
 0x16b   : > { %v541_v63 = vpop.f32.mrf.mxu1 }
 0x16c   : > { %418 = vst [vmem:[#allocation2 + $0x18] sm:$0xff] %v410_v61  ;;  %v542_v0 = vadd.f32 %v541_v63, %v540_v60 }
 0x16d   : > { %v543_v1 = vpop.f32.mrf.mxu1 }
 0x16e   : > { %v411_v2 = vadd.f32 %v542_v0, %v170_v62 }
 0x16f   : > { %v544_v4 = vpop.f32.mrf.mxu1 }
 0x170   : > { %419 = vst [vmem:[#allocation2 + $0x20] sm:$0xff] %v411_v2  ;;  %v545_v5 = vadd.f32 %v544_v4, %v543_v1 }
 0x171   : > { %v546_v6 = vpop.f32.mrf.mxu1 }
 0x172   : > { %v412_v7 = vadd.f32 %v545_v5, %v171_v3 }
 0x173   : > { %v547_v9 = vpop.f32.mrf.mxu1 }
 0x174   : > { %420 = vst [vmem:[#allocation2 + $0x28] sm:$0xff] %v412_v7  ;;  %v548_v10 = vadd.f32 %v547_v9, %v546_v6 }
 0x175   : > { %v549_v11 = vpop.f32.mrf.mxu1 }
 0x176   : > { %v413_v12 = vadd.f32 %v548_v10, %v172_v8 }
 0x177   : > { %v550_v14 = vpop.f32.mrf.mxu1 }
 0x178   : > { %421 = vst [vmem:[#allocation2 + $0x30] sm:$0xff] %v413_v12  ;;  %v551_v15 = vadd.f32 %v550_v14, %v549_v11 }
 0x17a   : > { %v414_v16 = vadd.f32 %v551_v15, %v173_v13 }
 0x17c   : > { %422 = vst [vmem:[#allocation2 + $0x38] sm:$0xff] %v414_v16 }
 0x17d   : > { %687 = shalt.err (!%p684_p12)
}
 0x17e   : > { %s712_s22 = smov 128   ;;  %s713_s23 = smov 8  }
 0x17f   : > { %585 = dma.vmem_to_hbm [thread:$0]  (%p588_p5), %s430_s20, 1024, %s832_s2, [#allocation3], %s712_s22, %s712_s22, %s713_s23  }
 0x180   : > { %703 = dma.done.wait (%p588_p5), [#allocation3], 1024  }
 0x181   : > { %705 = vsyncadd (%p588_p5), [#allocation3], 4294966272 }
 0x182 PF: > { %s13_s9 = sadd.s32 1, %s708_s9  }
 0x183   : > { %p10_p13 = scmp.ge.s32.totalorder %s13_s9, 6  }
 0x185   :  { %12 = sbr.rel (!%p10_p13) target bundleno = 1 (0x1), region = 62 }
 0x18a   :  { %445 = vsyncpa [#allocation3], 1 }
 0x18b   :  { %447 = vsyncpa [#allocation3 + $0x1], 1 }

</bundles_post_ra>
